<compile_context>
chip_gen: v6e
topology: v6e:2x2x1
jax: 0.10.0
libtpu: 0.0.40
codegen_flags: <defaults>
</compile_context>

<pallas_src>
from functools import partial

import jax
import jax.numpy as jnp
from jax.experimental import pallas as pl
from jax.experimental.pallas import tpu as pltpu

# ---- problem sizes (small, consistent with the module's defaults scaled down) ----
BATCH = 8
INPUT_DIM = 64
HIDDEN = 128          # lstm_hidden_dim
OUTPUT_DIM = 8
OUT_PAD = 128         # lane-dense FC output width inside the kernel


def _encoder_kernel(x_ref, h_ref, c_ref, w_ih_ref, w_hh_ref, b_ref, w_fc_ref,
                    out_ref, h_new_ref, c_new_ref):
    H = c_ref.shape[-1]
    G = 4 * H

    # In-kernel bf16 casts of the matmul operands (free VPU work, hidden under
    # the weight DMA); state math stays f32.
    x_bf = x_ref[...].astype(jnp.bfloat16)    # (B, D)
    h_bf = h_ref[...].astype(jnp.bfloat16)    # (B, H)
    c = c_ref[...]                            # (B, H) f32

    # Two accumulating MXU matmuls, f32 accumulation:
    #   gates = x @ W_ih^T + h @ W_hh^T + (b_ih + b_hh)   -> (B, 4H) f32
    gates = jnp.dot(x_bf, w_ih_ref[...], preferred_element_type=jnp.float32)
    gates = gates + jnp.dot(h_bf, w_hh_ref[...],
                            preferred_element_type=jnp.float32)
    gates = gates + b_ref[:, :G]              # packed bias, lane-aligned slice

    # PyTorch gate ordering: i, f, g, o  (all elementwise math in f32;
    # slices at multiples of H=128 are lane-aligned -> no XLU traffic)
    i_g = jax.nn.sigmoid(gates[:, 0 * H:1 * H])
    f_g = jax.nn.sigmoid(gates[:, 1 * H:2 * H])
    g_g = jnp.tanh(gates[:, 2 * H:3 * H])
    o_g = jax.nn.sigmoid(gates[:, 3 * H:4 * H])

    c_new = f_g * c + i_g * g_g
    h_new = o_g * jnp.tanh(c_new)

    # h/c outputs alias the h/c inputs (input_output_aliases) -> in-place state.
    c_new_ref[...] = c_new
    h_new_ref[...] = h_new

    # fc: lane-dense padded output (B, 128); bf16 MXU operands, f32 accumulate.
    out_ref[...] = (jnp.dot(h_new.astype(w_fc_ref.dtype), w_fc_ref[...],
                            preferred_element_type=jnp.float32)
                    + b_ref[:, G:])           # packed FC bias slice (1, 128)


def prepare_params(params):
    """One-time preprocessing of PyTorch-layout params into kernel layout."""
    w_ih, w_hh = params["w_ih"], params["w_hh"]            # (4H, D), (4H, H)
    b_ih, b_hh = params["b_ih"], params["b_hh"]            # (4H,), (4H,)
    w_fc, b_fc = params["w_fc"], params["b_fc"]            # (O, H), (O,)

    O, H = w_fc.shape

    # Separate transposed gate weights (two accumulating MXU matmuls), bf16.
    w_ih_t = w_ih.T.astype(jnp.bfloat16)                   # (D, 4H)
    w_hh_t = w_hh.T.astype(jnp.bfloat16)                   # (H, 4H)

    # Packed bias buffer: [b_ih + b_hh | fc bias padded to 128] -> (1, 4H+128) f32.
    b_all = jnp.zeros((1, 4 * H + OUT_PAD), jnp.float32)
    b_all = b_all.at[0, :4 * H].set((b_ih + b_hh).astype(jnp.float32))
    b_all = b_all.at[0, 4 * H:4 * H + O].set(b_fc.astype(jnp.float32))

    # Lane-dense FC weight: pad O=8 -> 128 columns (unmasked stores), bf16.
    w_fc_p = jnp.zeros((H, OUT_PAD), jnp.bfloat16)
    w_fc_p = w_fc_p.at[:, :O].set(w_fc.T.astype(jnp.bfloat16))

    return {
        "w_ih_t": w_ih_t,         # (D, 4H)       bf16
        "w_hh_t": w_hh_t,         # (H, 4H)       bf16
        "b_all": b_all,           # (1, 4H + 128) f32
        "w_fc": w_fc_p,           # (H, 128)      bf16
        "out_dim": O,             # python int (static)
    }


@partial(jax.jit, static_argnames=("out_dim",))
def _encoder_forward_impl(x, h0, c0, w_ih_t, w_hh_t, b_all, w_fc_p, out_dim):
    B = x.shape[0]
    D = w_ih_t.shape[0]
    H = w_hh_t.shape[0]
    G = 4 * H

    # Per-call glue is now only cheap reshapes (no concat / no wrapper cast).
    x2 = x.reshape(B, D).astype(jnp.float32)     # (B, D) f32
    h2 = h0.reshape(B, H).astype(jnp.float32)    # (B, H) f32
    c2 = c0.reshape(B, H).astype(jnp.float32)    # (B, H) f32

    vmem_spec = pl.BlockSpec(memory_space=pltpu.MemorySpace.VMEM)

    in_bytes = (x2.size * 4 + h2.size * 4 + c2.size * 4
                + w_ih_t.size * 2 + w_hh_t.size * 2
                + b_all.size * 4 + w_fc_p.size * 2)
    out_bytes = (B * OUT_PAD + 2 * B * H) * 4
    cost = pl.CostEstimate(
        flops=2 * B * D * G + 2 * B * H * G + 2 * B * H * OUT_PAD,
        transcendentals=5 * B * H,               # 3 sigmoid + 2 tanh
        bytes_accessed=in_bytes + out_bytes,
    )

    out_pad, h_new, c_new = pl.pallas_call(
        _encoder_kernel,
        out_shape=(
            jax.ShapeDtypeStruct((B, OUT_PAD), jnp.float32),
            jax.ShapeDtypeStruct((B, H), jnp.float32),
            jax.ShapeDtypeStruct((B, H), jnp.float32),
        ),
        in_specs=[vmem_spec] * 7,
        out_specs=(vmem_spec, vmem_spec, vmem_spec),
        # In-place recurrent state: h -> h', c -> c'  (P8)
        input_output_aliases={1: 1, 2: 2},
        compiler_params=pltpu.CompilerParams(vmem_limit_bytes=4 * 1024 * 1024),
        cost_estimate=cost,
    )(x2, h2, c2, w_ih_t, w_hh_t, b_all, w_fc_p)

    out = out_pad[:, :out_dim]
    return out, (h_new[None, ...], c_new[None, ...])


def encoder_forward(x, lstm_hiddens, prep):
    """Mirror of Encoder.forward.

    x:            (B, ...) -- flattened to (B, input_dim), like x.view(B, 1, -1)
    lstm_hiddens: (h0, c0), each of shape (1, B, H)  (PyTorch layout)
    prep:         output of prepare_params (weights already transposed / bf16)
    returns: (output (B, O), (h' (1, B, H), c' (1, B, H)))
    """
    h0, c0 = lstm_hiddens
    return _encoder_forward_impl(x, h0, c0, prep["w_ih_t"], prep["w_hh_t"],
                                 prep["b_all"], prep["w_fc"],
                                 out_dim=prep["out_dim"])


def init_params(key, input_dim, hidden, output_dim):
    """Deterministic init with PyTorch-style shapes (weight_ih: (4H, D), etc.)."""
    ks = jax.random.split(key, 6)
    k_lstm = 1.0 / jnp.sqrt(hidden)
    k_fc = 1.0 / jnp.sqrt(hidden)
    u = lambda k, shp, s: jax.random.uniform(k, shp, jnp.float32, -s, s)
    return {
        "w_ih": u(ks[0], (4 * hidden, input_dim), k_lstm),
        "w_hh": u(ks[1], (4 * hidden, hidden), k_lstm),
        "b_ih": u(ks[2], (4 * hidden,), k_lstm),
        "b_hh": u(ks[3], (4 * hidden,), k_lstm),
        "w_fc": u(ks[4], (output_dim, hidden), k_fc),
        "b_fc": u(ks[5], (output_dim,), k_fc),
    }


def _reference(x, lstm_hiddens, params):
    """Pure-JAX f32 reference of the same forward pass (for a sanity check)."""
    h0, c0 = lstm_hiddens
    B = x.shape[0]
    x2 = x.reshape(B, -1)
    h, c = h0[0], c0[0]
    H = h.shape[-1]
    gates = (x2 @ params["w_ih"].T + h @ params["w_hh"].T
             + params["b_ih"] + params["b_hh"])
    i = jax.nn.sigmoid(gates[:, 0 * H:1 * H])
    f = jax.nn.sigmoid(gates[:, 1 * H:2 * H])
    g = jnp.tanh(gates[:, 2 * H:3 * H])
    o = jax.nn.sigmoid(gates[:, 3 * H:4 * H])
    c_new = f * c + i * g
    h_new = o * jnp.tanh(c_new)
    out = h_new @ params["w_fc"].T + params["b_fc"]
    return out, (h_new[None], c_new[None])


if __name__ == "__main__":
    key = jax.random.PRNGKey(0)
    k_x, k_h, k_c, k_p = jax.random.split(key, 4)

    x = jax.random.normal(k_x, (BATCH, INPUT_DIM), jnp.float32)
    h0 = jax.random.normal(k_h, (1, BATCH, HIDDEN), jnp.float32)
    c0 = jax.random.normal(k_c, (1, BATCH, HIDDEN), jnp.float32)
    params = init_params(k_p, INPUT_DIM, HIDDEN, OUTPUT_DIM)

    prep = prepare_params(params)   # one-time weight preprocessing (hoisted)

    out, (h_new, c_new) = encoder_forward(x, (h0, c0), prep)
    jax.block_until_ready((out, h_new, c_new))

    # sanity check against pure-JAX f32 reference (bf16 matmul operands ->
    # tolerance ~1e-2, documented / expected)
    r_out, (r_h, r_c) = _reference(x, (h0, c0), params)
    assert out.shape == (BATCH, OUTPUT_DIM)
    assert h_new.shape == (1, BATCH, HIDDEN) and c_new.shape == (1, BATCH, HIDDEN)
    assert jnp.allclose(out, r_out, atol=2e-2, rtol=2e-2)
    assert jnp.allclose(h_new, r_h, atol=2e-2, rtol=2e-2)
    assert jnp.allclose(c_new, r_c, atol=2e-2, rtol=2e-2)

    print("KERNEL_OK")
</pallas_src>

<mosaic_0001>
module attributes {stable_mosaic.version = 11 : i64} {
  func.func @_encoder_kernel(%arg0: memref<8x64xf32, #tpu.memory_space<vmem>>, %arg1: memref<8x128xf32, #tpu.memory_space<vmem>>, %arg2: memref<8x128xf32, #tpu.memory_space<vmem>>, %arg3: memref<64x512xbf16, #tpu.memory_space<vmem>>, %arg4: memref<128x512xbf16, #tpu.memory_space<vmem>>, %arg5: memref<1x640xf32, #tpu.memory_space<vmem>>, %arg6: memref<128x128xbf16, #tpu.memory_space<vmem>>, %arg7: memref<8x128xf32, #tpu.memory_space<vmem>>, %arg8: memref<8x128xf32, #tpu.memory_space<vmem>>, %arg9: memref<8x128xf32, #tpu.memory_space<vmem>>) attributes {dimension_semantics = [], scalar_prefetch = 0 : i64, scratch_operands = 0 : i64, tpu.core_type = #tpu.core_type<tc>} {
    %c0 = arith.constant 0 : index
    %c0_0 = arith.constant 0 : index
    %0 = vector.load %arg0[%c0, %c0_0] : memref<8x64xf32, #tpu.memory_space<vmem>>, vector<8x64xf32>
    %1 = arith.truncf %0 : vector<8x64xf32> to vector<8x64xbf16>
    %c0_1 = arith.constant 0 : index
    %c0_2 = arith.constant 0 : index
    %2 = vector.load %arg1[%c0_1, %c0_2] : memref<8x128xf32, #tpu.memory_space<vmem>>, vector<8x128xf32>
    %3 = arith.truncf %2 : vector<8x128xf32> to vector<8x128xbf16>
    %c0_3 = arith.constant 0 : index
    %c0_4 = arith.constant 0 : index
    %4 = vector.load %arg2[%c0_3, %c0_4] : memref<8x128xf32, #tpu.memory_space<vmem>>, vector<8x128xf32>
    %c0_5 = arith.constant 0 : index
    %c0_6 = arith.constant 0 : index
    %5 = vector.load %arg3[%c0_5, %c0_6] : memref<64x512xbf16, #tpu.memory_space<vmem>>, vector<64x512xbf16>
    %cst = arith.constant dense<0.000000e+00> : vector<8x512xf32>
    %6 = tpu.matmul %1, %5, %cst {dimension_numbers = #tpu.dot_dimension_numbers<[1], [0], [0], [1], [0, 0, 1, 1], [], []>} : vector<8x64xbf16>, vector<64x512xbf16>, vector<8x512xf32> -> vector<8x512xf32>
    %c0_7 = arith.constant 0 : index
    %c0_8 = arith.constant 0 : index
    %7 = vector.load %arg4[%c0_7, %c0_8] : memref<128x512xbf16, #tpu.memory_space<vmem>>, vector<128x512xbf16>
    %cst_9 = arith.constant dense<0.000000e+00> : vector<8x512xf32>
    %8 = tpu.matmul %3, %7, %cst_9 {dimension_numbers = #tpu.dot_dimension_numbers<[1], [0], [0], [1], [0, 0, 1, 1], [], []>} : vector<8x128xbf16>, vector<128x512xbf16>, vector<8x512xf32> -> vector<8x512xf32>
    %9 = arith.addf %6, %8 : vector<8x512xf32>
    %c0_10 = arith.constant 0 : index
    %c0_11 = arith.constant 0 : index
    %10 = vector.load %arg5[%c0_10, %c0_11] : memref<1x640xf32, #tpu.memory_space<vmem>>, vector<1x512xf32>
    %11 = vector.broadcast %10 : vector<1x512xf32> to vector<8x512xf32>
    %12 = arith.addf %9, %11 : vector<8x512xf32>
    %13 = vector.extract_strided_slice %12 {offsets = [0, 0], sizes = [8, 128], strides = [1, 1]} : vector<8x512xf32> to vector<8x128xf32>
    %14 = arith.negf %13 : vector<8x128xf32>
    %15 = math.exp %14 : vector<8x128xf32>
    %cst_12 = arith.constant 1.000000e+00 : f32
    %16 = vector.broadcast %cst_12 : f32 to vector<8x128xf32>
    %17 = arith.addf %16, %15 : vector<8x128xf32>
    %18 = arith.divf %16, %17 : vector<8x128xf32>
    %19 = vector.extract_strided_slice %12 {offsets = [0, 128], sizes = [8, 128], strides = [1, 1]} : vector<8x512xf32> to vector<8x128xf32>
    %20 = arith.negf %19 : vector<8x128xf32>
    %21 = math.exp %20 : vector<8x128xf32>
    %cst_13 = arith.constant 1.000000e+00 : f32
    %22 = vector.broadcast %cst_13 : f32 to vector<8x128xf32>
    %23 = arith.addf %22, %21 : vector<8x128xf32>
    %24 = arith.divf %22, %23 : vector<8x128xf32>
    %25 = vector.extract_strided_slice %12 {offsets = [0, 256], sizes = [8, 128], strides = [1, 1]} : vector<8x512xf32> to vector<8x128xf32>
    %26 = math.tanh %25 : vector<8x128xf32>
    %27 = vector.extract_strided_slice %12 {offsets = [0, 384], sizes = [8, 128], strides = [1, 1]} : vector<8x512xf32> to vector<8x128xf32>
    %28 = arith.negf %27 : vector<8x128xf32>
    %29 = math.exp %28 : vector<8x128xf32>
    %cst_14 = arith.constant 1.000000e+00 : f32
    %30 = vector.broadcast %cst_14 : f32 to vector<8x128xf32>
    %31 = arith.addf %30, %29 : vector<8x128xf32>
    %32 = arith.divf %30, %31 : vector<8x128xf32>
    %33 = arith.mulf %24, %4 : vector<8x128xf32>
    %34 = arith.mulf %18, %26 : vector<8x128xf32>
    %35 = arith.addf %33, %34 : vector<8x128xf32>
    %36 = math.tanh %35 : vector<8x128xf32>
    %37 = arith.mulf %32, %36 : vector<8x128xf32>
    %c0_15 = arith.constant 0 : index
    %c0_16 = arith.constant 0 : index
    %38 = vector.load %arg9[%c0_15, %c0_16] : memref<8x128xf32, #tpu.memory_space<vmem>>, vector<8x128xf32>
    tpu.vector_store %arg9[%c0_15, %c0_16], %35 {strides = array<i32>} : memref<8x128xf32, #tpu.memory_space<vmem>>, vector<8x128xf32>,
    %c0_17 = arith.constant 0 : index
    %c0_18 = arith.constant 0 : index
    %39 = vector.load %arg8[%c0_17, %c0_18] : memref<8x128xf32, #tpu.memory_space<vmem>>, vector<8x128xf32>
    tpu.vector_store %arg8[%c0_17, %c0_18], %37 {strides = array<i32>} : memref<8x128xf32, #tpu.memory_space<vmem>>, vector<8x128xf32>,
    %40 = arith.truncf %37 : vector<8x128xf32> to vector<8x128xbf16>
    %c0_19 = arith.constant 0 : index
    %c0_20 = arith.constant 0 : index
    %41 = vector.load %arg6[%c0_19, %c0_20] : memref<128x128xbf16, #tpu.memory_space<vmem>>, vector<128x128xbf16>
    %cst_21 = arith.constant dense<0.000000e+00> : vector<8x128xf32>
    %42 = tpu.matmul %40, %41, %cst_21 {dimension_numbers = #tpu.dot_dimension_numbers<[1], [0], [0], [1], [0, 0, 1, 1], [], []>} : vector<8x128xbf16>, vector<128x128xbf16>, vector<8x128xf32> -> vector<8x128xf32>
    %c0_22 = arith.constant 0 : index
    %c512 = arith.constant 512 : index
    %43 = vector.load %arg5[%c0_22, %c512] : memref<1x640xf32, #tpu.memory_space<vmem>>, vector<1x128xf32>
    %44 = vector.broadcast %43 : vector<1x128xf32> to vector<8x128xf32>
    %45 = arith.addf %42, %44 : vector<8x128xf32>
    %c0_23 = arith.constant 0 : index
    %c0_24 = arith.constant 0 : index
    %46 = vector.load %arg7[%c0_23, %c0_24] : memref<8x128xf32, #tpu.memory_space<vmem>>, vector<8x128xf32>
    tpu.vector_store %arg7[%c0_23, %c0_24], %45 {strides = array<i32>} : memref<8x128xf32, #tpu.memory_space<vmem>>, vector<8x128xf32>,
    return
  }
}

</mosaic_0001>

<bundles_post_ra>
// kernel: _encoder_forward_impl.1
= control target key start
LH: loop header
LB: loop body
LE: loop exit
PB: predicated region body
PF: predicated region fallthrough
CT: control target
= control target key end

     0   :  { %15 = vsyncpa [#allocation3], 0  ;;  %s1106_s0 = inlined_call_operand.vmem [shape: f32[8,64], index: 0, kind: input, shape index: {}]   ;;  %s1107_s1 = inlined_call_operand.vmem [shape: f32[8,128], index: 1, kind: input, shape index: {}, may-alias: {1,8}]   ;;  %s1108_s2 = inlined_call_operand.vmem [shape: f32[8,128], index: 2, kind: input, shape index: {}, may-alias: {2,9}]   ;;  %s1109_s3 = inlined_call_operand.hbm [shape: bf16[64,512], index: 3, kind: input, shape index: {}]   ;;  %s1110_s4 = inlined_call_operand.hbm [shape: bf16[128,512], index: 4, kind: input, shape index: {}]   ;;  %s1111_s5 = inlined_call_operand.vmem [shape: f32[1,640], index: 5, kind: input, shape index: {}]   ;;  %s1112_s6 = inlined_call_operand.hbm [shape: bf16[128,128], index: 6, kind: input, shape index: {}]   ;;  %s1113_s7 = inlined_call_operand.hbm [shape: f32[8,128], index: 7, kind: output, shape index: {0}]   ;;  %s1114_s8 = inlined_call_operand.vmem [shape: f32[8,128], index: 8, kind: output, shape index: {1}, may-alias: {1,8}]   ;;  %s1115_s9 = inlined_call_operand.vmem [shape: f32[8,128], index: 9, kind: output, shape index: {2}, may-alias: {2,9}]  }
   0x1   :  { %16 = vsyncpa [#allocation6], 0 }
   0x2   :  { %17 = vsyncpa [#allocation4], 0  ;;  %s1006_s30 = smov [#allocation5]   ;;  %s1007_s11 = smov [#allocation2]  }
   0x3   :  { %s41_s10 = sshll.u32 %s1006_s30, 4  ;;  %s29_s12 = sshll.u32 %s1007_s11, 4  ;;  %s42_s10 = int_to_ptr.vmem [resolvable:$true] %s41_s10  ;;  %s30_s12 = int_to_ptr.vmem [resolvable:$true] %s29_s12 }
   0x4   :  { %s928_s13 = scalar_lea.vmem %s42_s10, 4096  ;;  %p933_p1 = scmp.lt.s32.totalorder %s42_s10, %s42_s10 }
   0x5   :  { %p929_p0 = scmp.ne.s32.totalorder %s42_s10, %s928_s13  ;;  %p934_p2 = scmp.lt.s32.totalorder %s928_s13, %s928_s13 }
   0x7   :  { %p935_p3 = por %p934_p2, %p933_p1 }
   0x9   :  { %p936_p4 = pnand %p935_p3, %p929_p0 }
   0xb   :  { %939 = shalt.err (!%p936_p4)
}
   0xc   :  { %s1008_s14 = smov 256   ;;  %s1009_s15 = smov 16  }
   0xd   :  { %47 = dma.hbm_to_vmem [thread:$0]  %s1110_s4, 4096, %s42_s10, [#allocation6], %s1008_s14, %s1008_s14, %s1009_s15  }
   0xe   :  { %s948_s18 = scalar_lea.vmem %s30_s12, 2048  ;;  %p953_p6 = scmp.lt.s32.totalorder %s30_s12, %s30_s12 }
   0xf   :  { %p949_p5 = scmp.ne.s32.totalorder %s30_s12, %s948_s18  ;;  %p954_p7 = scmp.lt.s32.totalorder %s948_s18, %s948_s18 }
  0x11   :  { %p955_p8 = por %p954_p7, %p953_p6 }
  0x13   :  { %p956_p9 = pnand %p955_p8, %p949_p5 }
  0x15   :  { %959 = shalt.err (!%p956_p9)
}
  0x16   :  { %35 = dma.hbm_to_vmem [thread:$0]  %s1109_s3, 2048, %s30_s12, [#allocation3], %s1008_s14, %s1008_s14, %s1009_s15  }
  0x17   :  { %s1010_s21 = smov [#allocation7]  }
  0x18   :  { %s55_s22 = sshll.u32 %s1010_s21, 4  ;;  %s56_s22 = int_to_ptr.vmem [resolvable:$true] %s55_s22 }
  0x19   :  { %s968_s23 = scalar_lea.vmem %s56_s22, 1024  ;;  %p973_p11 = scmp.lt.s32.totalorder %s56_s22, %s56_s22 }
  0x1a   :  { %p969_p10 = scmp.ne.s32.totalorder %s56_s22, %s968_s23  ;;  %p974_p12 = scmp.lt.s32.totalorder %s968_s23, %s968_s23 }
  0x1c   :  { %p975_p13 = por %p974_p12, %p973_p11 }
  0x1e   :  { %p976_p0 = pnand %p975_p13, %p969_p10 }
  0x20   :  { %979 = shalt.err (!%p976_p0)
}
  0x21   :  { %s1011_s4 = smov 64   ;;  %s1012_s24 = smov 4  }
  0x22   :  { %61 = dma.hbm_to_vmem [thread:$0]  %s1112_s6, 1024, %s56_s22, [#allocation6], %s1011_s4, %s1011_s4, %s1012_s24  }
  0x23   :  { %1000 = dma.done.wait [#allocation3], 2048  }
  0x24   :  { %1001 = vsyncadd [#allocation3], 4294965248 }
  0x25   :  { %1002 = dma.done.wait [#allocation6], 5120  }
  0x26   :  { %1003 = vsyncadd [#allocation6], 4294962176  ;;  %v1013_v0 = vmov 0   ;;  %v824_v1 = vld [vmem:[#allocation5 + $0xec] ss:$16 sps:$4 sm:$0xff]   ;;  %v74_v30 = vld [vmem:[%s1107_s1] sm:$0xff] }
  0x27   :  { %358 = vmatprep.mubr.bf16.mxu1 %v1013_v0  ;;  %317 = vmatprep.mubr.bf16.mxu0 %v1013_v0  ;;  %v826_v2 = vld [vmem:[#allocation5 + $0xe8] ss:$16 sps:$4 sm:$0xff]   ;;  %v827_v3 = vld [vmem:[#allocation5 + $0xcc] ss:$16 sps:$4 sm:$0xff]   ;;  %v833_v6 = vld [vmem:[#allocation5 + $0xe4] ss:$16 sps:$4 sm:$0xff]   ;;  %v75_v34 = vpack.c.bf16 %v74_v30, %v74_v30 }
  0x28   :  { %326 = vmatprep.subr.bf16.mxu1 %v824_v1  ;;  %v829_v4 = vld [vmem:[#allocation5 + $0xc8] ss:$16 sps:$4 sm:$0xff]   ;;  %v830_v5 = vld [vmem:[#allocation5 + $0xac] ss:$16 sps:$4 sm:$0xff]   ;;  %v835_v7 = vld [vmem:[#allocation5 + $0xe0] ss:$16 sps:$4 sm:$0xff]   ;;  %285 = vmatprep.subr.bf16.mxu0 %v833_v6 }
  0x29   :  { %327 = vmatpush1.bf16.msra.mxu1 %v826_v2  ;;  %v832_v8 = vld [vmem:[#allocation5 + $0xa8] ss:$16 sps:$4 sm:$0xff]   ;;  %286 = vmatpush1.bf16.msra.mxu0 %v835_v7  ;;  %v839_v9 = vld [vmem:[#allocation5 + $0xc4] ss:$16 sps:$4 sm:$0xff]   ;;  %v841_v10 = vld [vmem:[#allocation5 + $0xc0] ss:$16 sps:$4 sm:$0xff]  }
  0x2a   :  { %328 = vmatprep.subr.bf16.mxu1 %v827_v3  ;;  %v836_v11 = vld [vmem:[#allocation5 + $0x8c] ss:$16 sps:$4 sm:$0xff]   ;;  %287 = vmatprep.subr.bf16.mxu0 %v839_v9  ;;  %v838_v12 = vld [vmem:[#allocation5 + $0x88] ss:$16 sps:$4 sm:$0xff]   ;;  %v845_v13 = vld [vmem:[#allocation5 + $0xa4] ss:$16 sps:$4 sm:$0xff]  }
  0x2b   :  { %v842_v14 = vld [vmem:[#allocation5 + $0x6c] ss:$16 sps:$4 sm:$0xff]   ;;  %v847_v15 = vld [vmem:[#allocation5 + $0xa0] ss:$16 sps:$4 sm:$0xff]   ;;  %v851_v16 = vld [vmem:[#allocation5 + $0x84] ss:$16 sps:$4 sm:$0xff]  }
  0x2c   :  { %v844_v17 = vld [vmem:[#allocation5 + $0x68] ss:$16 sps:$4 sm:$0xff]   ;;  %v848_v18 = vld [vmem:[#allocation5 + $0x4c] ss:$16 sps:$4 sm:$0xff]   ;;  %v853_v19 = vld [vmem:[#allocation5 + $0x80] ss:$16 sps:$4 sm:$0xff]  }
  0x2d   :  { %329 = vmatpush1.bf16.msra.mxu1 %v829_v4  ;;  %288 = vmatpush1.bf16.msra.mxu0 %v841_v10  ;;  %v857_v20 = vld [vmem:[#allocation5 + $0x64] ss:$16 sps:$4 sm:$0xff]   ;;  %v850_v21 = vld [vmem:[#allocation5 + $0x48] ss:$16 sps:$4 sm:$0xff]   ;;  %v854_v22 = vld [vmem:[#allocation5 + $0x2c] ss:$16 sps:$4 sm:$0xff]  }
  0x2e   :  { %330 = vmatprep.subr.bf16.mxu1 %v830_v5  ;;  %289 = vmatprep.subr.bf16.mxu0 %v845_v13  ;;  %v859_v23 = vld [vmem:[#allocation5 + $0x60] ss:$16 sps:$4 sm:$0xff]   ;;  %v863_v24 = vld [vmem:[#allocation5 + $0x44] ss:$16 sps:$4 sm:$0xff]   ;;  %v856_v25 = vld [vmem:[#allocation5 + $0x28] ss:$16 sps:$4 sm:$0xff]  }
  0x2f   :  { %v860_v26 = vld [vmem:[#allocation5 + $0xc] ss:$16 sps:$4 sm:$0xff]   ;;  %v865_v27 = vld [vmem:[#allocation5 + $0x40] ss:$16 sps:$4 sm:$0xff]   ;;  %v869_v28 = vld [vmem:[#allocation5 + $0x24] ss:$16 sps:$4 sm:$0xff]  }
  0x30   :  { %v862_v29 = vld [vmem:[#allocation5 + $0x8] ss:$16 sps:$4 sm:$0xff]   ;;  %v871_v31 = vld [vmem:[#allocation5 + $0x20] ss:$16 sps:$4 sm:$0xff]   ;;  %v868_v32 = vld [vmem:[#allocation2 + $0x64] ss:$16 sps:$4 sm:$0xff]  }
  0x31   :  { %331 = vmatpush1.bf16.msra.mxu1 %v832_v8  ;;  %290 = vmatpush1.bf16.msra.mxu0 %v847_v15  ;;  %v875_v33 = vld [vmem:[#allocation5 + $0x4] ss:$16 sps:$4 sm:$0xff]   ;;  %v866_v35 = vld [vmem:[#allocation2 + $0x60] ss:$16 sps:$4 sm:$0xff]   ;;  %v886_v44 = vld [vmem:[#allocation2 + $0x6c] ss:$16 sps:$4 sm:$0xff]  }
  0x32   :  { %332 = vmatprep.subr.bf16.mxu1 %v836_v11  ;;  %291 = vmatprep.subr.bf16.mxu0 %v851_v16  ;;  %v877_v36 = vld [vmem:[#allocation5] ss:$16 sps:$4 sm:$0xff]   ;;  %v874_v37 = vld [vmem:[#allocation2 + $0x44] ss:$16 sps:$4 sm:$0xff]   ;;  %vm447_vm0 = vcmask 523264   ;;  %v896_v53 = vld [vmem:[#allocation7 + $0x38] sm:$0xff]  }
  0x33   :  { %v872_v38 = vld [vmem:[#allocation2 + $0x40] ss:$16 sps:$4 sm:$0xff]   ;;  %v880_v39 = vld [vmem:[#allocation2 + $0x24] ss:$16 sps:$4 sm:$0xff]   ;;  %v884_v46 = vld [vmem:[#allocation2 + $0x68] ss:$16 sps:$4 sm:$0xff]  }
  0x34   :  { %v878_v40 = vld [vmem:[#allocation2 + $0x20] ss:$16 sps:$4 sm:$0xff]   ;;  %v883_v41 = vld [vmem:[#allocation2 + $0x4] ss:$16 sps:$4 sm:$0xff]   ;;  %v889_v47 = vld [vmem:[#allocation2 + $0x4c] ss:$16 sps:$4 sm:$0xff]  }
  0x35   :  { %333 = vmatpush1.bf16.msra.mxu1 %v838_v12  ;;  %292 = vmatpush1.bf16.msra.mxu0 %v853_v19  ;;  %v881_v42 = vld [vmem:[#allocation2] ss:$16 sps:$4 sm:$0xff]   ;;  %v887_v48 = vld [vmem:[#allocation2 + $0x48] ss:$16 sps:$4 sm:$0xff]   ;;  %v892_v49 = vld [vmem:[#allocation2 + $0x2c] ss:$16 sps:$4 sm:$0xff]  }
  0x36   :  { %334 = vmatprep.subr.bf16.mxu1 %v842_v14  ;;  %293 = vmatprep.subr.bf16.mxu0 %v857_v20  ;;  %v72_v43 = vld [vmem:[%s1106_s0] sm:$0xff]  ;;  %v890_v50 = vld [vmem:[#allocation2 + $0x28] ss:$16 sps:$4 sm:$0xff]   ;;  %v895_v51 = vld [vmem:[#allocation2 + $0xc] ss:$16 sps:$4 sm:$0xff]   ;;  %v1014_v54 = vmov 0.0  }
  0x37   :  { %v73_v45 = vpack.c.bf16 %v72_v43, %v72_v43  ;;  %v893_v52 = vld [vmem:[#allocation2 + $0x8] ss:$16 sps:$4 sm:$0xff]   ;;  %v897_v55 = vld [vmem:[#allocation7 + $0x30] sm:$0xff]   ;;  %v899_v57 = vld [vmem:[#allocation7 + $0x20] sm:$0xff]   ;;  %vm1015_vm1 = vmmov 0   ;;  %s1016_s15 = smov [#allocation8]  }
  0x38   :  { %v898_v56 = vld [vmem:[#allocation7 + $0x28] sm:$0xff]   ;;  %v900_v58 = vld [vmem:[#allocation7 + $0x18] sm:$0xff]   ;;  %v901_v59 = vld [vmem:[#allocation7 + $0x10] sm:$0xff]   ;;  %s704_s16 = sshll.u32 %s1016_s15, 4  ;;  %s705_s16 = int_to_ptr.vmem [resolvable:$true] %s704_s16 }
  0x39   :  { %335 = vmatpush1.bf16.msra.mxu1 %v844_v17  ;;  %294 = vmatpush1.bf16.msra.mxu0 %v859_v23  ;;  %v902_v60 = vld [vmem:[#allocation7 + $0x8] sm:$0xff]   ;;  %v903_v61 = vld [vmem:[#allocation7] sm:$0xff]   ;;  %p985_p2 = scmp.lt.s32.totalorder %s705_s16, %s705_s16 }
  0x3a   :  { %336 = vmatprep.subr.bf16.mxu1 %v848_v18  ;;  %295 = vmatprep.subr.bf16.mxu0 %v863_v24  ;;  %v533_v9 = vld [vmem:[%s1111_s5] sm:$0xf] }
  0x3d   :  { %337 = vmatpush1.bf16.msra.mxu1 %v850_v21  ;;  %296 = vmatpush1.bf16.msra.mxu0 %v865_v27 }
  0x3e   :  { %338 = vmatprep.subr.bf16.mxu1 %v854_v22  ;;  %297 = vmatprep.subr.bf16.mxu0 %v869_v28 }
  0x41   :  { %339 = vmatpush1.bf16.msra.mxu1 %v856_v25  ;;  %298 = vmatpush1.bf16.msra.mxu0 %v871_v31 }
  0x42   :  { %340 = vmatprep.subr.bf16.mxu1 %v860_v26  ;;  %299 = vmatprep.subr.bf16.mxu0 %v875_v33 }
  0x45   :  { %341 = vmatpush1.bf16.msra.mxu1 %v862_v29  ;;  %300 = vmatpush1.bf16.msra.mxu0 %v877_v36 }
  0x46   :  { %459 = vmatprep.subr.bf16.mxu1 %v868_v32  ;;  %793 = vmatprep.subr.bf16.mxu0 %v1014_v54 }
  0x48   :  { %359 = vmatmul.mubr.bf16.vlgmr.msra.gmra.mxu1 %v75_v34  ;;  %318 = vmatmul.mubr.bf16.vlgmr.msra.gmra.mxu0 %v75_v34 }
  0x49   :  { %460 = vmatpush1.bf16.msra.mxu1 %v866_v35  ;;  %483 = vmatprep.mubr.bf16.mxu1 %v1013_v0 }
  0x4a   :  { %461 = vmatprep.subr.bf16.mxu1 %v874_v37  ;;  %794 = vmatpush3.bf16.msra.mxu0 %v896_v53  ;;  %v775_v53 = vld [vmem:[%s1111_s5 + $0x4] ss:$0 sm:$0xff] }
  0x4b   :  { %795 = vmatprep.subr.bf16.mxu0 %v1014_v54  ;;  %809 = vmatprep.mubr.msk.bf16.mxu0 %vm1015_vm1, %v1014_v54 }
  0x4d   :  { %462 = vmatpush1.bf16.msra.mxu1 %v872_v38 }
  0x4e   :  { %463 = vmatprep.subr.bf16.mxu1 %v880_v39  ;;  %796 = vmatpush3.bf16.msra.mxu0 %v897_v55 }
  0x4f   :  { %797 = vmatprep.subr.bf16.mxu0 %v1014_v54 }
  0x51   :  { %464 = vmatpush1.bf16.msra.mxu1 %v878_v40 }
  0x52   :  { %465 = vmatprep.subr.bf16.mxu1 %v883_v41  ;;  %798 = vmatpush3.bf16.msra.mxu0 %v898_v56  ;;  %v76_v41 = vld [vmem:[%s1108_s2] sm:$0xff] }
  0x53   :  { %799 = vmatprep.subr.bf16.mxu0 %v1014_v54 }
  0x55   :  { %466 = vmatpush1.bf16.msra.mxu1 %v881_v42 }
  0x56   :  { %500 = vmatprep.subr.bf16.mxu1 %v886_v44  ;;  %800 = vmatpush3.bf16.msra.mxu0 %v899_v57 }
  0x57   :  { %801 = vmatprep.subr.bf16.mxu0 %v1014_v54 }
  0x58   :  { %770 = vmatmul.mubr.msk.bf16.vlgmr.msra.gmra.mxu1 %vm447_vm0, %v73_v45 }
  0x59   :  { %501 = vmatpush1.bf16.msra.mxu1 %v884_v46  ;;  %524 = vmatprep.mubr.bf16.mxu1 %v1013_v0  ;;  %v535_v0 = vlaneseq }
  0x5a   :  { %502 = vmatprep.subr.bf16.mxu1 %v889_v47  ;;  %802 = vmatpush3.bf16.msra.mxu0 %v900_v58 }
  0x5b   :  { %803 = vmatprep.subr.bf16.mxu0 %v1014_v54  ;;  %v536_v5 = vshrl.u32 %v535_v0, 7 }
  0x5d   :  { %503 = vmatpush1.bf16.msra.mxu1 %v887_v48  ;;  %v537_v8 = vsub.s32 0, %v536_v5  ;;  %v541_v10 = vsub.s32 1, %v536_v5  ;;  %v545_v23 = vsub.s32 2, %v536_v5  ;;  %v549_v24 = vsub.s32 3, %v536_v5 }
  0x5e   :  { %504 = vmatprep.subr.bf16.mxu1 %v892_v49  ;;  %804 = vmatpush3.bf16.msra.mxu0 %v901_v59 }
  0x5f   :  { %805 = vmatprep.subr.bf16.mxu0 %v1014_v54  ;;  %v538_v11 = vrot.slane %v533_v9, %v537_v8  ;;  %v542_v14 = vrot.slane %v533_v9, %v541_v10  ;;  %v546_v26 = vrot.slane %v533_v9, %v545_v23  ;;  %v550_v28 = vrot.slane %v533_v9, %v549_v24 }
  0x61   :  { %505 = vmatpush1.bf16.msra.mxu1 %v890_v50 }
  0x62   :  { %506 = vmatprep.subr.bf16.mxu1 %v895_v51  ;;  %806 = vmatpush3.bf16.msra.mxu0 %v902_v60 }
  0x63   :  { %807 = vmatprep.subr.bf16.mxu0 %v1014_v54 }
  0x65   :  { %507 = vmatpush1.bf16.msra.mxu1 %v893_v52 }
  0x66   :  { %808 = vmatpush3.bf16.msra.mxu0 %v903_v61 }
  0x68   :  { %771 = vmatmul.mubr.msk.bf16.vlgmr.msra.gmra.mxu1 %vm447_vm0, %v73_v45 }
 0x108   :  { %v360_v62 = vpop.f32.mrf.mxu1  ;;  %v319_v2 = vpop.f32.mrf.mxu0 }
 0x10a   :  { %v362_v63 = vpop.f32.mrf.mxu1  ;;  %v321_v4 = vpop.f32.mrf.mxu0 }
 0x10c   :  { %v364_v1 = vpop.f32.mrf.mxu1  ;;  %v323_v6 = vpop.f32.mrf.mxu0 }
 0x10e   :  { %v365_v3 = vpop.f32.mrf.mxu1  ;;  %v324_v7 = vpop.f32.mrf.mxu0 }
 0x118   :  { %v485_v12 = vpop.f32.mrf.mxu1 }
 0x119   :  { %v486_v13 = vadd.f32 %v485_v12, %v319_v2 }
 0x11a   :  { %v487_v15 = vpop.f32.mrf.mxu1 }
 0x11b   :  { %v555_v16 = vadd.f32 %v538_v11, %v486_v13  ;;  %v488_v17 = vadd.f32 %v487_v15, %v321_v4 }
 0x11c   :  { %v489_v18 = vpop.f32.mrf.mxu1 }
 0x11d   :  { %v772_v19 = vmul.f32 -1.442695, %v555_v16  ;;  %v556_v20 = vadd.f32 %v542_v14, %v488_v17 }
 0x11e   :  { %v490_v21 = vpop.f32.mrf.mxu1 }
 0x11f   :  { %904 = vpow2.f32 %v772_v19  ;;  %v773_v22 = vmul.f32 -1.442695, %v556_v20 }
 0x121   :  { %906 = vpow2.f32 %v773_v22 }
 0x128   :  { %v526_v25 = vpop.f32.mrf.mxu1 }
 0x129   :  { %v527_v27 = vadd.f32 %v526_v25, %v360_v62 }
 0x12a   :  { %v528_v29 = vpop.f32.mrf.mxu1 }
 0x12b   :  { %v529_v30 = vadd.f32 %v528_v29, %v362_v63  ;;  %v557_v32 = vadd.f32 %v546_v26, %v527_v27 }
 0x12c   :  { %v905_v31 = vpop.eup %904  ;;  %v530_v33 = vpop.f32.mrf.mxu1 }
 0x12d   :  { %v562_v34 = vadd.f32 1.0, %v905_v31  ;;  %v558_v35 = vadd.f32 %v550_v28, %v529_v30 }
 0x12e   :  { %v907_v36 = vpop.eup %906  ;;  %v531_v37 = vpop.f32.mrf.mxu1 }
 0x12f   :  { %908 = vrcp.f32 %v562_v34  ;;  %v568_v38 = vadd.f32 1.0, %v907_v36  ;;  %v774_v39 = vmul.f32 -1.442695, %v558_v35 }
 0x130   :  { %910 = vtanh.f32 %v557_v32 }
 0x131   :  { %912 = vrcp.f32 %v568_v38 }
 0x132   :  { %914 = vpow2.f32 %v774_v39 }
 0x13c   :  { %v909_v40 = vpop.eup %908 }
 0x13d   :  { %v911_v42 = vpop.eup %910 }
 0x13e   :  { %v913_v43 = vpop.eup %912  ;;  %v579_v46 = vmul.f32 %v911_v42, %v909_v40 }
 0x13f   :  { %v915_v44 = vpop.eup %914  ;;  %v578_v45 = vmul.f32 %v913_v43, %v76_v41 }
 0x140   :  { %v575_v47 = vadd.f32 1.0, %v915_v44 }
 0x141   :  { %v580_v48 = vadd.f32 %v579_v46, %v578_v45 }
 0x142   :  { %916 = vrcp.f32 %v575_v47 }
 0x143   :  { %918 = vtanh.f32 %v580_v48  ;;  %583 = vst [vmem:[%s1115_s9] sm:$0xff] %v580_v48  ;;  %s980_s9 = scalar_lea.vmem %s705_s16, 128 }
 0x144   :  { %p981_p1 = scmp.ne.s32.totalorder %s705_s16, %s980_s9  ;;  %p986_p3 = scmp.lt.s32.totalorder %s980_s9, %s980_s9 }
 0x146   :  { %p987_p4 = por %p986_p3, %p985_p2 }
 0x148   :  { %p988_p5 = pnand %p987_p4, %p981_p1 }
 0x14f   :  { %v917_v49 = vpop.eup %916 }
 0x150   :  { %v919_v50 = vpop.eup %918 }
 0x151   :  { %v582_v51 = vmul.f32 %v919_v50, %v917_v49 }
 0x153   :  { %584 = vst [vmem:[%s1114_s8] sm:$0xff] %v582_v51  ;;  %v585_v52 = vpack.c.bf16 %v582_v51, %v582_v51 }
 0x155   :  { %810 = vmatmul.mubr.bf16.vlgmr.msra.gmra.mxu0 %v585_v52 }
 0x215   :  { %v691_v54 = vpop.f32.mrf.mxu0 }
 0x216   :  { %v692_v55 = vadd.f32 %v775_v53, %v691_v54 }
 0x217   :  { %v811_v56 = vpop.f32.mrf.mxu0 }
 0x218   :  { %697 = vst [vmem:[#allocation8] sm:$0xff] %v692_v55 }
 0x219   :  { %v694_v57 = vpop.f32.mrf.mxu0 }
 0x21a   :  { %991 = shalt.err (!%p988_p5)
}
 0x21b   :  { %707 = dma.vmem_to_hbm [thread:$0]  %s705_s16, 128, %s1113_s7, [#allocation4]   ;;  %v812_v58 = vpop.f32.mrf.mxu0 }
 0x21c   :  { %1004 = dma.done.wait [#allocation4], 128  }
 0x21d   :  { %1005 = vsyncadd [#allocation4], 4294967168 }
 0x21e   :  { %719 = vsyncpa [#allocation3], 1 }
 0x21f   :  { %720 = vsyncpa [#allocation6], 1 }
 0x220   :  { %721 = vsyncpa [#allocation4], 1 }

</bundles_post_ra>
